<compile_context>
chip_gen: v5e
topology: v5e:2x2
jax: 0.10.0
libtpu: 0.0.40
codegen_flags: <defaults>
</compile_context>

<pallas_src>
import jax
import jax.numpy as jnp
from jax.experimental import pallas as pl
from jax.experimental.pallas import tpu as pltpu


ENV_SIZE = 3        # in_features of the Linear
OUT_FEATURES = 1    # out_features of the Linear

LANE = 128          # TPU lane width
TR_MAX = 1024       # sublane-rows per grid step (=> 131072 batch elems/step)


def _linear3_kernel(params_ref, x_ref, o_ref):
    """o = w0*x0 + w1*x1 + w2*x2 + b on dense (TR, 128) batch slabs.

    params_ref : SMEM (4,)          f32 -- [w0, w1, w2, bias]
    x_ref      : VMEM (3, TR, 128)  f32 -- per-feature batch slabs
    o_ref      : VMEM (TR, 128)     f32 -- output batch slab
    """
    w0 = params_ref[0]
    w1 = params_ref[1]
    w2 = params_ref[2]
    b = params_ref[3]
    o_ref[...] = x_ref[0] * w0 + x_ref[1] * w1 + x_ref[2] * w2 + b


def _round_up(n, m):
    return ((n + m - 1) // m) * m


@jax.jit
def stopping_car_invariant_net(x, weight, bias):
    """Forward pass of StoppingCarInvariantNet.

    x      : (B, 3) float32
    weight : (1, 3) float32  (torch Linear layout: (out, in))
    bias   : (1,)   float32
    returns: (B, 1) float32
    """
    B = x.shape[0]

    # Rows of 128 batch elements; tile rows so every block is full-extent.
    r = pl.cdiv(B, LANE)
    if r <= TR_MAX:
        tr = r                      # single grid step, block = full extent
        r_pad = r
    else:
        tr = TR_MAX                 # multiple of 8 -> valid sublane tiling
        r_pad = _round_up(r, TR_MAX)
    b_pad = r_pad * LANE
    grid = (r_pad // tr,)

    # Layout plumbing: batch on lanes AND sublanes.  (3, B) transpose, pad
    # batch to b_pad, then a free contiguous reshape to (3, r_pad, 128).
    x_t = x.astype(jnp.float32).T                        # (3, B)
    if b_pad != B:
        x_t = jnp.pad(x_t, ((0, 0), (0, b_pad - B)))     # (3, b_pad)
    x_rt = x_t.reshape(ENV_SIZE, r_pad, LANE)            # (3, r_pad, 128)

    # Scalar parameters -> one tiny SMEM-resident array [w0, w1, w2, bias].
    params = jnp.concatenate(
        [weight.astype(jnp.float32).reshape(-1),
         bias.astype(jnp.float32).reshape(-1)])          # (4,)

    out = pl.pallas_call(
        _linear3_kernel,
        out_shape=jax.ShapeDtypeStruct((r_pad, LANE), jnp.float32),
        grid_spec=pltpu.PrefetchScalarGridSpec(
            num_scalar_prefetch=0,
            grid=grid,
            in_specs=[
                # Whole (4,) params array lives in SMEM for all grid steps.
                pl.BlockSpec(memory_space=pltpu.MemorySpace.SMEM),
                # Per-feature dense batch slabs: (3, tr, 128).
                pl.BlockSpec((ENV_SIZE, tr, LANE), lambda i: (0, i, 0)),
            ],
            out_specs=pl.BlockSpec((tr, LANE), lambda i: (i, 0)),
        ),
        compiler_params=pltpu.CompilerParams(
            dimension_semantics=("parallel",)),
    )(params, x_rt)

    # Free reshape + slice back to the module's (B, 1) output.
    return out.reshape(b_pad)[:B].reshape(B, OUT_FEATURES)


if __name__ == "__main__":
    key = jax.random.PRNGKey(0)
    k_x, k_b = jax.random.split(key)

    # Parameters matching the module's __init__: weight fixed to [[1, -1, 0]];
    # bias drawn with the nn.Linear uniform(-1/sqrt(3), 1/sqrt(3)) law
    # (seeded by PRNGKey(0); not bitwise-equal to torch, same distribution).
    weight = jnp.array([[1.0, -1.0, 0.0]], dtype=jnp.float32)
    bound = 1.0 / (3.0 ** 0.5)
    bias = jax.random.uniform(k_b, (OUT_FEATURES,), jnp.float32,
                              minval=-bound, maxval=bound)

    # Small example input: batch=8, env_size=3.
    x = jax.random.normal(k_x, (8, ENV_SIZE), dtype=jnp.float32)

    out = stopping_car_invariant_net(x, weight, bias)
    out = jax.block_until_ready(out)

    # Pure-JAX reference check.
    ref = x @ weight.T + bias
    assert out.shape == (8, OUT_FEATURES), out.shape
    assert jnp.allclose(out, ref, atol=1e-5, rtol=1e-5), (out, ref)

    print("KERNEL_OK")
</pallas_src>

<mosaic_0001>
module attributes {stable_mosaic.version = 11 : i64} {
  func.func @_linear3_kernel(%arg0: i32, %arg1: memref<4xf32, #tpu.memory_space<smem>>, %arg2: memref<3x1x128xf32, #tpu.memory_space<vmem>>, %arg3: memref<1x128xf32, #tpu.memory_space<vmem>>) attributes {dimension_semantics = [#tpu.dimension_semantics<parallel>], iteration_bounds = array<i64: 1>, scalar_prefetch = 0 : i64, scratch_operands = 0 : i64, tpu.core_type = #tpu.core_type<tc>, window_params = [{transform_indices = @transform_0, window_bounds = array<i64: 4>}, {transform_indices = @transform_1, window_bounds = array<i64: 3, 1, 128>}, {transform_indices = @transform_2, window_bounds = array<i64: 1, 128>}]} {
    %c0 = arith.constant 0 : index
    %0 = memref.load %arg1[%c0] : memref<4xf32, #tpu.memory_space<smem>>
    %c1 = arith.constant 1 : index
    %1 = memref.load %arg1[%c1] : memref<4xf32, #tpu.memory_space<smem>>
    %c2 = arith.constant 2 : index
    %2 = memref.load %arg1[%c2] : memref<4xf32, #tpu.memory_space<smem>>
    %c3 = arith.constant 3 : index
    %3 = memref.load %arg1[%c3] : memref<4xf32, #tpu.memory_space<smem>>
    %c0_0 = arith.constant 0 : index
    %c0_1 = arith.constant 0 : index
    %c0_2 = arith.constant 0 : index
    %4 = vector.load %arg2[%c0_0, %c0_1, %c0_2] : memref<3x1x128xf32, #tpu.memory_space<vmem>>, vector<1x1x128xf32>
    %5 = vector.shape_cast %4 : vector<1x1x128xf32> to vector<1x128xf32>
    %6 = vector.broadcast %0 : f32 to vector<1x128xf32>
    %7 = arith.mulf %5, %6 : vector<1x128xf32>
    %c1_3 = arith.constant 1 : index
    %c0_4 = arith.constant 0 : index
    %c0_5 = arith.constant 0 : index
    %8 = vector.load %arg2[%c1_3, %c0_4, %c0_5] : memref<3x1x128xf32, #tpu.memory_space<vmem>>, vector<1x1x128xf32>
    %9 = vector.shape_cast %8 : vector<1x1x128xf32> to vector<1x128xf32>
    %10 = vector.broadcast %1 : f32 to vector<1x128xf32>
    %11 = arith.mulf %9, %10 : vector<1x128xf32>
    %12 = arith.addf %7, %11 : vector<1x128xf32>
    %c2_6 = arith.constant 2 : index
    %c0_7 = arith.constant 0 : index
    %c0_8 = arith.constant 0 : index
    %13 = vector.load %arg2[%c2_6, %c0_7, %c0_8] : memref<3x1x128xf32, #tpu.memory_space<vmem>>, vector<1x1x128xf32>
    %14 = vector.shape_cast %13 : vector<1x1x128xf32> to vector<1x128xf32>
    %15 = vector.broadcast %2 : f32 to vector<1x128xf32>
    %16 = arith.mulf %14, %15 : vector<1x128xf32>
    %17 = arith.addf %12, %16 : vector<1x128xf32>
    %18 = vector.broadcast %3 : f32 to vector<1x128xf32>
    %19 = arith.addf %17, %18 : vector<1x128xf32>
    %c0_9 = arith.constant 0 : index
    %c0_10 = arith.constant 0 : index
    %20 = vector.load %arg3[%c0_9, %c0_10] : memref<1x128xf32, #tpu.memory_space<vmem>>, vector<1x128xf32>
    tpu.vector_store %arg3[%c0_9, %c0_10], %19 {strides = array<i32>} : memref<1x128xf32, #tpu.memory_space<vmem>>, vector<1x128xf32>,
    return
  }
  func.func @transform_0(%arg0: i32) -> i32 {
    %c0_i32 = arith.constant 0 : i32
    %c0_i32_0 = arith.constant 0 : i32
    return %c0_i32 : i32
  }
  func.func @transform_1(%arg0: i32) -> (i32, i32, i32) {
    %c0_i32 = arith.constant 0 : i32
    %c0_i32_0 = arith.constant 0 : i32
    %c0_i32_1 = arith.constant 0 : i32
    return %c0_i32, %arg0, %c0_i32_0 : i32, i32, i32
  }
  func.func @transform_2(%arg0: i32) -> (i32, i32) {
    %c0_i32 = arith.constant 0 : i32
    %c0_i32_0 = arith.constant 0 : i32
    return %arg0, %c0_i32 : i32, i32
  }
}

</mosaic_0001>

<bundles_post_ra>
// kernel: stopping_car_invariant_net.1
= control target key start
LH: loop header
LB: loop body
LE: loop exit
PB: predicated region body
PF: predicated region fallthrough
CT: control target
= control target key end

     0   :  { %7 = vsyncpa [#allocation3], 0  ;;  %s69_s12 = smov [#allocation2]   ;;  %s100_s0 = inlined_call_operand.vmem [shape: f32[4], index: 0, kind: input, shape index: {}]   ;;  %s101_s1 = inlined_call_operand.vmem [shape: f32[3,1,128], index: 1, kind: input, shape index: {}]   ;;  %s102_s2 = inlined_call_operand.vmem [shape: f32[1,128], index: 2, kind: output, shape index: {}]  }
   0x1   :  { %s13_s11 = sshll.u32 %s100_s0, 4  ;;  %s14_s11 = int_to_ptr.vmem [resolvable:$true] %s13_s11 }
   0x2   :  { %16 = dma.vmem_to_smem %s14_s11, 16, %s69_s12, [#allocation3]  }
   0x3   :  { %67 = dma.done.wait [#allocation3], 16  }
   0x4   :  { %68 = vsyncadd [#allocation3], 4294967280 }
   0x5   :  { %23 = sfence }
   0x6   :  { %s24_s13 = sld [smem:[#allocation2]]  ;;  %v28_v0 = vld [vmem:[%s101_s1] sm:$0x1]  ;;  %v52_v1 = vld [vmem:[%s101_s1 + $0x1] sm:$0x1] }
   0x7   :  { %s49_s14 = sld [smem:[#allocation2 + $0x1]]  ;;  %v53_v3 = vld [vmem:[%s101_s1 + $0x2] sm:$0x1] }
   0x8   :  { %s50_s15 = sld [smem:[#allocation2 + $0x2]] }
   0x9   :  { %s51_s16 = sld [smem:[#allocation2 + $0x3]] }
   0xc   :  { %v29_v2 = vstv %s24_s13 }
   0xd   :  { %v30_v4 = vmul.f32 %v29_v2, %v28_v0  ;;  %v33_v5 = vstv %s49_s14 }
   0xe   :  { %v34_v6 = vmul.f32 %v52_v1, %v33_v5  ;;  %v38_v7 = vstv %s50_s15 }
   0xf   :  { %v39_v8 = vmul.f32 %v53_v3, %v38_v7  ;;  %v41_v10 = vstv %s51_s16 }
  0x10   :  { %v35_v9 = vadd.f32 %v34_v6, %v30_v4 }
  0x12   :  { %v40_v11 = vadd.f32 %v39_v8, %v35_v9 }
  0x14   :  { %v42_v12 = vadd.f32 %v41_v10, %v40_v11 }
  0x16   :  { %43 = vst [vmem:[%s102_s2] sm:$0x1] %v42_v12 }
  0x17   :  { %48 = vsyncpa [#allocation3], 1 }

</bundles_post_ra>
